<compile_context>
chip_gen: v7x
topology: tpu7x:2x2x1
jax: 0.10.0
libtpu: 0.0.40
codegen_flags: <defaults>
</compile_context>

<pallas_src>
import functools

import jax
import jax.numpy as jnp
from jax.experimental import pallas as pl
from jax.experimental.pallas import tpu as pltpu


# ---------------------------------------------------------------------------
# Pallas kernel: one destination-node row block per grid step, batch packed
# along lanes.  4 matmuls total, all f32 accumulation, f32 elementwise gating.
# ---------------------------------------------------------------------------
def _tgcn2_kernel(a_ref, xp_ref, hp_ref, wc_ref, bc_ref, w2_ref, wh2_ref,
                  out_ref, *, bf):
    a = a_ref[...]          # (block_n, N)        bf16  rows of A-hat
    xp = xp_ref[...]        # (N, B*Fin)          bf16  all source-node features
    hp = hp_ref[...]        # (block_n, B*Fout)   f32   hidden state rows

    # 1) A @ X for every batch element at once (batch packed along lanes).
    ax = jnp.dot(a, xp, preferred_element_type=jnp.float32)

    # 2) Fused, pre-folded conv -> gate matmul.  Column groups: [z | r | h],
    #    each group laid out as (batch, Fout) to match hp's packing.
    g = jnp.dot(ax.astype(jnp.bfloat16), wc_ref[...],
                preferred_element_type=jnp.float32) + bc_ref[...]

    # 3) Fused H-side gate matmul for the z and r gates ([lz2 | lr2]).
    zr = jnp.dot(hp.astype(jnp.bfloat16), w2_ref[...],
                 preferred_element_type=jnp.float32)

    # Elementwise gating in f32.
    z = jax.nn.sigmoid(g[:, :bf] + zr[:, :bf])
    r = jax.nn.sigmoid(g[:, bf:2 * bf] + zr[:, bf:2 * bf])

    # 4) Candidate state: (H * R) @ lh2 has to follow R.
    h_tilde = jnp.tanh(
        g[:, 2 * bf:]
        + jnp.dot((hp * r).astype(jnp.bfloat16), wh2_ref[...],
                  preferred_element_type=jnp.float32))

    # GRU blend.  Output stays lane-packed (block_n, B*Fout).
    out_ref[...] = z * hp + (1.0 - z) * h_tilde


# ---------------------------------------------------------------------------
# Wrapper-side parameter folding / block-diagonal packing (exact linear algebra,
# done once in f32, then cast to bf16 for the MXU).
# ---------------------------------------------------------------------------
def _fold_and_pack_params(p, batch):
    f_in, f_out = p["wz"].shape
    eye = jnp.eye(batch, dtype=jnp.float32)

    # conv_g @ Lg1 == A @ X @ (Wg @ Lg1) + (bg @ Lg1)   (exact)
    w_fold = jnp.stack(
        [p["wz"] @ p["lz1"], p["wr"] @ p["lr1"], p["wh"] @ p["lh1"]], axis=0
    )                                                    # (3, Fin, Fout)  [z,r,h]
    b_fold = jnp.stack(
        [p["bz"] @ p["lz1"] + p["lbz"],
         p["br"] @ p["lr1"] + p["lbr"],
         p["bh"] @ p["lh1"] + p["lbh"]], axis=0)         # (3, 1, Fout)

    # Block-diagonal per-batch expansion.  Output column index is
    #   gate * (B*Fout) + b * Fout + o   -> contiguous [z | r | h] slabs whose
    # inner (b, o) order matches the packed H layout (N, B*Fout).
    wc = jnp.einsum("bc,gio->bigco", eye, w_fold).reshape(
        batch * f_in, 3 * batch * f_out)
    bc = jnp.broadcast_to(b_fold, (3, batch, f_out)).reshape(
        1, 3 * batch * f_out)

    l2 = jnp.stack([p["lz2"], p["lr2"]], axis=0)         # (2, Fout, Fout)
    w2 = jnp.einsum("bc,gfo->bfgco", eye, l2).reshape(
        batch * f_out, 2 * batch * f_out)
    wh2 = jnp.einsum("bc,fo->bfco", eye, p["lh2"]).reshape(
        batch * f_out, batch * f_out)

    return (wc.astype(jnp.bfloat16), bc.astype(jnp.float32),
            w2.astype(jnp.bfloat16), wh2.astype(jnp.bfloat16))


def tgcn2_pallas(a_hat, x, h, params, *, block_n=None):
    """TGCN2 cell.  x: (B,N,Fin), h: (B,N,Fout), a_hat: (N,N) dense normalized adj."""
    batch, n_nodes, f_in = x.shape
    f_out = h.shape[-1]
    bf = batch * f_out

    if block_n is None:
        block_n = n_nodes if n_nodes <= 256 else 256
    assert n_nodes % block_n == 0, "block_n must divide the number of nodes"
    assert block_n == n_nodes or block_n % 16 == 0, \
        "row block must be a multiple of 16 (bf16 sublane packing) or full N"

    wc, bc, w2, wh2 = _fold_and_pack_params(params, batch)

    # Pack batch into the lane dimension: (B, N, F) -> (N, B*F).  Layout glue in
    # plain JAX (outside the kernel), so no in-kernel relayout copies.
    xp = jnp.transpose(x, (1, 0, 2)).reshape(n_nodes, batch * f_in)
    hp = jnp.transpose(h, (1, 0, 2)).reshape(n_nodes, bf).astype(jnp.float32)

    const = lambda shape: pl.BlockSpec(shape, lambda i: (0, 0))
    rows = lambda cols: pl.BlockSpec((block_n, cols), lambda i: (i, 0))

    out_p = pl.pallas_call(
        functools.partial(_tgcn2_kernel, bf=bf),
        out_shape=jax.ShapeDtypeStruct((n_nodes, bf), jnp.float32),
        grid=(n_nodes // block_n,),
        in_specs=[
            rows(n_nodes),                    # A-hat rows for this dest block
            const((n_nodes, batch * f_in)),   # packed X, all source nodes
            rows(bf),                         # packed H rows
            const((batch * f_in, 3 * bf)),    # fused conv->gate weights
            const((1, 3 * bf)),               # fused gate biases (f32)
            const((bf, 2 * bf)),              # H-side [lz2 | lr2]
            const((bf, bf)),                  # (H*R)-side lh2
        ],
        out_specs=rows(bf),
        compiler_params=pltpu.CompilerParams(
            dimension_semantics=("parallel",)),
    )(
        a_hat.astype(jnp.bfloat16),
        xp.astype(jnp.bfloat16),
        hp,
        wc, bc, w2, wh2,
    )

    # Unpack (N, B*Fout) -> (B, N, Fout) in the wrapper.
    return jnp.transpose(out_p.reshape(n_nodes, batch, f_out), (1, 0, 2))


# ---------------------------------------------------------------------------
# Glue: dense GCN-normalized adjacency from edge_index / edge_weight (plain JAX,
# done once — scatter has no clean Pallas equivalent and is not the hot path).
# ---------------------------------------------------------------------------
def gcn_norm_dense(edge_index, edge_weight, num_nodes, improved=False):
    """Â = D^{-1/2} (A + fill*I) D^{-1/2}, returned dense as [dst, src]."""
    fill = 2.0 if improved else 1.0
    src, dst = edge_index[0], edge_index[1]
    if edge_weight is None:
        edge_weight = jnp.ones(src.shape[0], dtype=jnp.float32)

    loop_idx = jnp.arange(num_nodes, dtype=src.dtype)
    src = jnp.concatenate([src, loop_idx])
    dst = jnp.concatenate([dst, loop_idx])
    w = jnp.concatenate([edge_weight, jnp.full((num_nodes,), fill, jnp.float32)])

    deg = jnp.zeros(num_nodes, jnp.float32).at[dst].add(w)
    dinv = jnp.where(deg > 0, 1.0 / jnp.sqrt(deg), 0.0)
    norm = dinv[src] * w * dinv[dst]

    a_hat = jnp.zeros((num_nodes, num_nodes), jnp.float32).at[dst, src].add(norm)
    return a_hat


# ---------------------------------------------------------------------------
# Pure-JAX f32 reference with the ORIGINAL (un-folded) structure, for checking.
# ---------------------------------------------------------------------------
def tgcn2_reference(a_hat, x, h, p):
    def gcn(w, b):
        return jnp.einsum("nm,bmo->bno", a_hat, jnp.einsum("bni,io->bno", x, w)) + b

    z = jax.nn.sigmoid(gcn(p["wz"], p["bz"]) @ p["lz1"] + h @ p["lz2"] + p["lbz"])
    r = jax.nn.sigmoid(gcn(p["wr"], p["br"]) @ p["lr1"] + h @ p["lr2"] + p["lbr"])
    h_tilde = jnp.tanh(gcn(p["wh"], p["bh"]) @ p["lh1"] + (h * r) @ p["lh2"] + p["lbh"])
    return z * h + (1.0 - z) * h_tilde


# ---------------------------------------------------------------------------
if __name__ == "__main__":
    B, N, F_IN, F_OUT = 2, 32, 4, 32   # 2 row blocks of 16 -> exercises the grid

    key = jax.random.PRNGKey(0)
    ks = jax.random.split(key, 20)

    def init(k, shape, scale=0.1):
        return (scale * jax.random.normal(k, shape)).astype(jnp.float32)

    params = {
        # GCNConv weights (Fin -> Fout) + bias
        "wz": init(ks[0], (F_IN, F_OUT)), "bz": init(ks[1], (1, F_OUT)),
        "wr": init(ks[2], (F_IN, F_OUT)), "br": init(ks[3], (1, F_OUT)),
        "wh": init(ks[4], (F_IN, F_OUT)), "bh": init(ks[5], (1, F_OUT)),
        # Linear(2*Fout -> Fout) split into conv-half (l*1) and H-half (l*2)
        "lz1": init(ks[6], (F_OUT, F_OUT)), "lz2": init(ks[7], (F_OUT, F_OUT)),
        "lbz": init(ks[8], (1, F_OUT)),
        "lr1": init(ks[9], (F_OUT, F_OUT)), "lr2": init(ks[10], (F_OUT, F_OUT)),
        "lbr": init(ks[11], (1, F_OUT)),
        "lh1": init(ks[12], (F_OUT, F_OUT)), "lh2": init(ks[13], (F_OUT, F_OUT)),
        "lbh": init(ks[14], (1, F_OUT)),
    }

    x = jax.random.normal(ks[15], (B, N, F_IN), dtype=jnp.float32)
    h0 = jnp.zeros((B, N, F_OUT), dtype=jnp.float32)   # as in _set_hidden_state

    # Simple deterministic graph: bidirectional ring over N nodes + weights.
    src = jnp.arange(N, dtype=jnp.int32)
    dst = (src + 1) % N
    edge_index = jnp.stack(
        [jnp.concatenate([src, dst]), jnp.concatenate([dst, src])], axis=0)
    edge_weight = (jnp.abs(jax.random.normal(ks[16], (edge_index.shape[1],)))
                   + 0.5).astype(jnp.float32)

    a_hat = gcn_norm_dense(edge_index, edge_weight, N, improved=False)

    # Two recurrent steps: the second exercises the H and H*R paths (h0 is zero).
    h1 = tgcn2_pallas(a_hat, x, h0, params, block_n=16)
    h2 = tgcn2_pallas(a_hat, x, h1, params, block_n=16)
    jax.block_until_ready(h2)

    h1_ref = tgcn2_reference(a_hat, x, h0, params)
    h2_ref = tgcn2_reference(a_hat, x, h1_ref, params)

    assert h1.shape == (B, N, F_OUT)
    # bf16 matmul inputs (f32 accumulation) vs f32 reference -> relaxed tolerance.
    assert jnp.allclose(h1, h1_ref, atol=2e-2, rtol=2e-2), "step-1 mismatch"
    assert jnp.allclose(h2, h2_ref, atol=2e-2, rtol=2e-2), "step-2 mismatch"

    # TODO(synk): for sequence use, fold the time loop into the kernel (T grid
    # axis marked "arbitrary", H resident in VMEM scratch, X_t streamed per step).
    print("KERNEL_OK")
</pallas_src>

<mosaic_0001>
module attributes {stable_mosaic.version = 11 : i64} {
  func.func @_tgcn2_kernel(%arg0: i32, %arg1: memref<16x32xbf16, #tpu.memory_space<vmem>>, %arg2: memref<32x8xbf16, #tpu.memory_space<vmem>>, %arg3: memref<16x64xf32, #tpu.memory_space<vmem>>, %arg4: memref<8x192xbf16, #tpu.memory_space<vmem>>, %arg5: memref<1x192xf32, #tpu.memory_space<vmem>>, %arg6: memref<64x128xbf16, #tpu.memory_space<vmem>>, %arg7: memref<64x64xbf16, #tpu.memory_space<vmem>>, %arg8: memref<16x64xf32, #tpu.memory_space<vmem>>) attributes {dimension_semantics = [#tpu.dimension_semantics<parallel>], iteration_bounds = array<i64: 2>, scalar_prefetch = 0 : i64, scratch_operands = 0 : i64, tpu.core_type = #tpu.core_type<tc>, window_params = [{transform_indices = @transform_0, window_bounds = array<i64: 16, 32>}, {pipeline_mode = #tpu.pipeline_mode<synchronous>, transform_indices = @transform_1, window_bounds = array<i64: 32, 8>}, {transform_indices = @transform_2, window_bounds = array<i64: 16, 64>}, {pipeline_mode = #tpu.pipeline_mode<synchronous>, transform_indices = @transform_3, window_bounds = array<i64: 8, 192>}, {pipeline_mode = #tpu.pipeline_mode<synchronous>, transform_indices = @transform_4, window_bounds = array<i64: 1, 192>}, {pipeline_mode = #tpu.pipeline_mode<synchronous>, transform_indices = @transform_5, window_bounds = array<i64: 64, 128>}, {pipeline_mode = #tpu.pipeline_mode<synchronous>, transform_indices = @transform_6, window_bounds = array<i64: 64, 64>}, {transform_indices = @transform_7, window_bounds = array<i64: 16, 64>}]} {
    %c0 = arith.constant 0 : index
    %c0_0 = arith.constant 0 : index
    %0 = vector.load %arg1[%c0, %c0_0] : memref<16x32xbf16, #tpu.memory_space<vmem>>, vector<16x32xbf16>
    %c0_1 = arith.constant 0 : index
    %c0_2 = arith.constant 0 : index
    %1 = vector.load %arg2[%c0_1, %c0_2] : memref<32x8xbf16, #tpu.memory_space<vmem>>, vector<32x8xbf16>
    %c0_3 = arith.constant 0 : index
    %c0_4 = arith.constant 0 : index
    %2 = vector.load %arg3[%c0_3, %c0_4] : memref<16x64xf32, #tpu.memory_space<vmem>>, vector<16x64xf32>
    %cst = arith.constant dense<0.000000e+00> : vector<16x8xf32>
    %3 = tpu.matmul %0, %1, %cst {dimension_numbers = #tpu.dot_dimension_numbers<[1], [0], [0], [1], [0, 0, 1, 1], [], []>} : vector<16x32xbf16>, vector<32x8xbf16>, vector<16x8xf32> -> vector<16x8xf32>
    %4 = arith.truncf %3 : vector<16x8xf32> to vector<16x8xbf16>
    %c0_5 = arith.constant 0 : index
    %c0_6 = arith.constant 0 : index
    %5 = vector.load %arg4[%c0_5, %c0_6] : memref<8x192xbf16, #tpu.memory_space<vmem>>, vector<8x192xbf16>
    %cst_7 = arith.constant dense<0.000000e+00> : vector<16x192xf32>
    %6 = tpu.matmul %4, %5, %cst_7 {dimension_numbers = #tpu.dot_dimension_numbers<[1], [0], [0], [1], [0, 0, 1, 1], [], []>} : vector<16x8xbf16>, vector<8x192xbf16>, vector<16x192xf32> -> vector<16x192xf32>
    %c0_8 = arith.constant 0 : index
    %c0_9 = arith.constant 0 : index
    %7 = vector.load %arg5[%c0_8, %c0_9] : memref<1x192xf32, #tpu.memory_space<vmem>>, vector<1x192xf32>
    %8 = vector.broadcast %7 : vector<1x192xf32> to vector<16x192xf32>
    %9 = arith.addf %6, %8 : vector<16x192xf32>
    %10 = arith.truncf %2 : vector<16x64xf32> to vector<16x64xbf16>
    %c0_10 = arith.constant 0 : index
    %c0_11 = arith.constant 0 : index
    %11 = vector.load %arg6[%c0_10, %c0_11] : memref<64x128xbf16, #tpu.memory_space<vmem>>, vector<64x128xbf16>
    %cst_12 = arith.constant dense<0.000000e+00> : vector<16x128xf32>
    %12 = tpu.matmul %10, %11, %cst_12 {dimension_numbers = #tpu.dot_dimension_numbers<[1], [0], [0], [1], [0, 0, 1, 1], [], []>} : vector<16x64xbf16>, vector<64x128xbf16>, vector<16x128xf32> -> vector<16x128xf32>
    %13 = vector.extract_strided_slice %9 {offsets = [0, 0], sizes = [16, 64], strides = [1, 1]} : vector<16x192xf32> to vector<16x64xf32>
    %14 = vector.extract_strided_slice %12 {offsets = [0, 0], sizes = [16, 64], strides = [1, 1]} : vector<16x128xf32> to vector<16x64xf32>
    %15 = arith.addf %13, %14 : vector<16x64xf32>
    %16 = arith.negf %15 : vector<16x64xf32>
    %17 = math.exp %16 : vector<16x64xf32>
    %cst_13 = arith.constant 1.000000e+00 : f32
    %18 = vector.broadcast %cst_13 : f32 to vector<16x64xf32>
    %19 = arith.addf %18, %17 : vector<16x64xf32>
    %20 = arith.divf %18, %19 : vector<16x64xf32>
    %21 = vector.extract_strided_slice %9 {offsets = [0, 64], sizes = [16, 64], strides = [1, 1]} : vector<16x192xf32> to vector<16x64xf32>
    %22 = vector.extract_strided_slice %12 {offsets = [0, 64], sizes = [16, 64], strides = [1, 1]} : vector<16x128xf32> to vector<16x64xf32>
    %23 = arith.addf %21, %22 : vector<16x64xf32>
    %24 = arith.negf %23 : vector<16x64xf32>
    %25 = math.exp %24 : vector<16x64xf32>
    %cst_14 = arith.constant 1.000000e+00 : f32
    %26 = vector.broadcast %cst_14 : f32 to vector<16x64xf32>
    %27 = arith.addf %26, %25 : vector<16x64xf32>
    %28 = arith.divf %26, %27 : vector<16x64xf32>
    %29 = vector.extract_strided_slice %9 {offsets = [0, 128], sizes = [16, 64], strides = [1, 1]} : vector<16x192xf32> to vector<16x64xf32>
    %30 = arith.mulf %2, %28 : vector<16x64xf32>
    %31 = arith.truncf %30 : vector<16x64xf32> to vector<16x64xbf16>
    %c0_15 = arith.constant 0 : index
    %c0_16 = arith.constant 0 : index
    %32 = vector.load %arg7[%c0_15, %c0_16] : memref<64x64xbf16, #tpu.memory_space<vmem>>, vector<64x64xbf16>
    %cst_17 = arith.constant dense<0.000000e+00> : vector<16x64xf32>
    %33 = tpu.matmul %31, %32, %cst_17 {dimension_numbers = #tpu.dot_dimension_numbers<[1], [0], [0], [1], [0, 0, 1, 1], [], []>} : vector<16x64xbf16>, vector<64x64xbf16>, vector<16x64xf32> -> vector<16x64xf32>
    %34 = arith.addf %29, %33 : vector<16x64xf32>
    %35 = math.tanh %34 : vector<16x64xf32>
    %36 = arith.mulf %20, %2 : vector<16x64xf32>
    %cst_18 = arith.constant 1.000000e+00 : f32
    %37 = vector.broadcast %cst_18 : f32 to vector<16x64xf32>
    %38 = arith.subf %37, %20 : vector<16x64xf32>
    %39 = arith.mulf %38, %35 : vector<16x64xf32>
    %40 = arith.addf %36, %39 : vector<16x64xf32>
    %c0_19 = arith.constant 0 : index
    %c0_20 = arith.constant 0 : index
    %41 = vector.load %arg8[%c0_19, %c0_20] : memref<16x64xf32, #tpu.memory_space<vmem>>, vector<16x64xf32>
    tpu.vector_store %arg8[%c0_19, %c0_20], %40 {strides = array<i32>} : memref<16x64xf32, #tpu.memory_space<vmem>>, vector<16x64xf32>,
    return
  }
  func.func @transform_0(%arg0: i32) -> (i32, i32) {
    %c0_i32 = arith.constant 0 : i32
    %c0_i32_0 = arith.constant 0 : i32
    return %arg0, %c0_i32 : i32, i32
  }
  func.func @transform_1(%arg0: i32) -> (i32, i32) {
    %c0_i32 = arith.constant 0 : i32
    %c0_i32_0 = arith.constant 0 : i32
    %c0_i32_1 = arith.constant 0 : i32
    return %c0_i32, %c0_i32_0 : i32, i32
  }
  func.func @transform_2(%arg0: i32) -> (i32, i32) {
    %c0_i32 = arith.constant 0 : i32
    %c0_i32_0 = arith.constant 0 : i32
    return %arg0, %c0_i32 : i32, i32
  }
  func.func @transform_3(%arg0: i32) -> (i32, i32) {
    %c0_i32 = arith.constant 0 : i32
    %c0_i32_0 = arith.constant 0 : i32
    %c0_i32_1 = arith.constant 0 : i32
    return %c0_i32, %c0_i32_0 : i32, i32
  }
  func.func @transform_4(%arg0: i32) -> (i32, i32) {
    %c0_i32 = arith.constant 0 : i32
    %c0_i32_0 = arith.constant 0 : i32
    %c0_i32_1 = arith.constant 0 : i32
    return %c0_i32, %c0_i32_0 : i32, i32
  }
  func.func @transform_5(%arg0: i32) -> (i32, i32) {
    %c0_i32 = arith.constant 0 : i32
    %c0_i32_0 = arith.constant 0 : i32
    %c0_i32_1 = arith.constant 0 : i32
    return %c0_i32, %c0_i32_0 : i32, i32
  }
  func.func @transform_6(%arg0: i32) -> (i32, i32) {
    %c0_i32 = arith.constant 0 : i32
    %c0_i32_0 = arith.constant 0 : i32
    %c0_i32_1 = arith.constant 0 : i32
    return %c0_i32, %c0_i32_0 : i32, i32
  }
  func.func @transform_7(%arg0: i32) -> (i32, i32) {
    %c0_i32 = arith.constant 0 : i32
    %c0_i32_0 = arith.constant 0 : i32
    return %arg0, %c0_i32 : i32, i32
  }
}

</mosaic_0001>

<bundles_post_ra>
// kernel: tpu_custom_call.1
= control target key start
LH: loop header
LB: loop body
LE: loop exit
PB: predicated region body
PF: predicated region fallthrough
CT: control target
= control target key end

     0   :  { %s1628_s0 = inlined_call_operand.hbm [shape: bf16[32,32], index: 0, kind: input, shape index: {}]   ;;  %s1629_s1 = inlined_call_operand.vmem [shape: bf16[32,8], index: 1, kind: input, shape index: {}]   ;;  %s1630_s2 = inlined_call_operand.hbm [shape: f32[32,64], index: 2, kind: input, shape index: {}]   ;;  %s1631_s3 = inlined_call_operand.hbm [shape: bf16[8,192], index: 3, kind: input, shape index: {}]   ;;  %s1632_s4 = inlined_call_operand.vmem [shape: f32[1,192], index: 4, kind: input, shape index: {}]   ;;  %s1633_s5 = inlined_call_operand.vmem [shape: bf16[64,128], index: 5, kind: input, shape index: {}]   ;;  %s1634_s6 = inlined_call_operand.hbm [shape: bf16[64,64], index: 6, kind: input, shape index: {}]   ;;  %s1635_s7 = inlined_call_operand.hbm [shape: f32[32,64], index: 7, kind: output, shape index: {}]  }
   0x1   :  { %1645 = sst [smem:[#allocation20_spill]] %s1631_s3 }
   0x2   :  { %12 = vsyncpa [#allocation3], 0 }
   0x3   :  { %14 = vsyncpa [#allocation3 + $0x1], 0 }
   0x4   :  { %15 = vsyncpa [#allocation6], 0 }
   0x5   :  { %17 = vsyncpa [#allocation6 + $0x1], 0 }
   0x6   :  { %18 = vsyncpa [#allocation9], 0 }
   0x7   :  { %19 = vsyncpa [#allocation4], 0 }
   0x8   :  { %21 = vsyncpa [#allocation4 + $0x1], 0  ;;  %s1281_s24 = smov 0   ;;  %s1283_s25 = smov 0  }
   0x9   :  { %s1285_s26 = smov 0   ;;  %s1287_s27 = smov 0  }
   0xa LB: > { %1646 = sst [smem:[#allocation16_spill]] %s1220_s26  ;;  %s1302_s28 = sadd.s32 4294967295, %s1224_s27   ;;  %s1224_s27 = sphi %s1287_s27, %s1670_s27   ;;  %s1220_s26 = sphi %s1285_s26, %s1672_s26   ;;  %s1216_s25 = sphi %s1283_s25, %s1674_s25   ;;  %s1212_s24 = sphi %s1281_s24, %s1673_s24  }
   0xb   : > { %s833_s29 = sadd.s32 4294967294, %s1224_s27   ;;  %s1306_s30 = sadd.s32 1, %s1224_s27  }
   0xc   : > { %1647 = sst [smem:[#allocation17_spill]] %s1306_s30  ;;  %s34_s8 = sadd.s32 1, %s1220_s26 }
   0xd   : > { %s31_s9 = ssub.s32 %s1224_s27, %s1306_s30  ;;  %p41_p0 = scmp.ne.s32.totalorder %s1220_s26, %s1216_s25 }
   0xe   : > { %p32_p1 = scmp.eq.s32.totalorder %s31_s9, 0  ;;  %p42_p2 = scmp.eq.s32.totalorder %s1224_s27, 0 }
   0xf   : > { %p47_p3 = scmp.ne.s32.totalorder %s1216_s25, %s1212_s24  ;;  %p1636_p4 = scmp.eq.s32.totalorder %s1302_s28, 0 }
  0x10   : > { %s1318_s10 = scalar_select %p32_p1, %s1220_s26, %s34_s8  }
  0x11   : > { %p1320_p5 = por %p42_p2, %p41_p0  ;;  %p1326_p6 = por %p1636_p4, %p47_p3 }
  0x12   : > { %1648 = sst [smem:[#allocation18_spill]] %s1318_s10  ;;  %p202_p7 = scmp.eq.s32.totalorder %s1302_s28, 1 }
  0x13   : > { %s1650_s12 = scalar_select %p1326_p6, 1, 0 }
  0x14   : > { %p208_p8 = scmp.eq.s32.totalorder %s833_s29, 1  ;;  %p834_p9 = scmp.ge.s32.totalorder %s1224_s27, 1 }
  0x15   : > { %p215_p10 = scmp.lt.s32.totalorder %s1224_s27, 3  ;;  %p1333_p11 = por %p202_p7, %p41_p0 }
  0x16   : > { %p1337_p12 = por %p208_p8, %p47_p3  ;;  %s1226_s16 = smov [#allocation7]  }
  0x17   : > { %s1651_s13 = scalar_select %p1333_p11, 1, 0 }
  0x18   : > { %s1652_s14 = scalar_select %p1337_p12, 1, 0 }
  0x19   : > { %p1341_p13 = pnand %p834_p9, %p215_p10  ;;  %s231_s17 = sshll.u32 %s1226_s16, 4  ;;  %s232_s17 = int_to_ptr.vmem [resolvable:$true] %s231_s17 }
  0x1a   : > { %1653 = sst [smem:[#allocation19_spill]] %s1652_s14  ;;  %p957_p4 = scmp.lt.s32.totalorder %s1224_s27, 2 }
  0x1b   : > { %s1654_s15 = scalar_select %p1341_p13, 1, 0 }
  0x1c   : > { %p937_p2 = pneg %p1341_p13  ;;  %p1655_p0 = scmp.eq.s32.totalorder %s1302_s28, 0 }
  0x1d   : > { %p1357_p3 = pnand %p957_p4, %p1320_p5  ;;  %s1227_s20 = smov [#allocation8]  }
  0x1e   : > { %p1351_p7 = pnand %p937_p2, %p1655_p0  ;;  %s247_s21 = sshll.u32 %s1227_s20, 4  ;;  %s1361_s21 = int_to_ptr.vmem [resolvable:$true] %s247_s21 }
  0x1f   : > { %s1657_s19 = scalar_select %p1357_p3, 1, 0 }
  0x20   : > { %s1658_s3 = sld [smem:[#allocation20_spill]]  ;;  %p1032_p9 = pneg %p1351_p7 }
  0x26   : > { %s1030_s29 = scalar_lea.hbm %s1658_s3, 128 }
  0x27   : > { %p1031_p8 = scmp.ne.s32.totalorder %s1658_s3, %s1030_s29  ;;  %p1037_p10 = scmp.lt.u32.totalorder %s1030_s29, %s1658_s3 }
  0x29   : > { %p1033_p4 = pnand %p1032_p9, %p1031_p8 }
  0x2b   : > { %p1034_p5 = pneg %p1033_p4 }
  0x2d   : > { %p1039_p2 = pnand %p1037_p10, %p1034_p5 }
  0x2f   : > { %1042 = shalt.err (!%p1039_p2)
}
  0x30   : > { %s1043_s20 = scalar_lea.vmem %s232_s17, 128  ;;  %p1051_p11 = scmp.lt.s32.totalorder %s232_s17, %s232_s17 }
  0x31   : > { %p1044_p0 = scmp.ne.s32.totalorder %s232_s17, %s1043_s20  ;;  %p1052_p6 = scmp.lt.s32.totalorder %s1043_s20, %s1043_s20 }
  0x33   : > { %p1046_p1 = pnand %p1044_p0, %p1032_p9  ;;  %p1053_p13 = por %p1052_p6, %p1051_p11 }
  0x35   : > { %p1047_p12 = pneg %p1046_p1 }
  0x37   : > { %p1054_p3 = pnand %p1053_p13, %p1047_p12 }
  0x39   : > { %1057 = shalt.err (!%p1054_p3)
}
  0x3a   : > { %940 = dma.hbm_to_vmem [thread:$0]  (!%p1351_p7), %s1658_s3, 128, %s232_s17, [#allocation6]  }
  0x3b   : > { %s1386_s29 = sand.u32 1, %s1220_s26   ;;  %s1058_s11 = scalar_lea.hbm %s1634_s6, 512 }
  0x3c   : > { %p1059_p6 = scmp.ne.s32.totalorder %s1634_s6, %s1058_s11  ;;  %p1065_p13 = scmp.lt.u32.totalorder %s1058_s11, %s1634_s6 }
  0x3e   : > { %p1061_p11 = pnand %p1059_p6, %p1032_p9 }
  0x40   : > { %p1062_p12 = pneg %p1061_p11 }
  0x42   : > { %p1067_p1 = pnand %p1065_p13, %p1062_p12 }
  0x44   : > { %1070 = shalt.err (!%p1067_p1)
}
  0x45   : > { %s1071_s17 = scalar_lea.vmem %s1361_s21, 512  ;;  %p1079_p5 = scmp.lt.s32.totalorder %s1361_s21, %s1361_s21 }
  0x46   : > { %p1072_p3 = scmp.ne.s32.totalorder %s1361_s21, %s1071_s17  ;;  %p1080_p10 = scmp.lt.s32.totalorder %s1071_s17, %s1071_s17 }
  0x48   : > { %p1074_p8 = pnand %p1072_p3, %p1032_p9  ;;  %p1081_p2 = por %p1080_p10, %p1079_p5 }
  0x4a   : > { %p1075_p4 = pneg %p1074_p8 }
  0x4c   : > { %p1082_p0 = pnand %p1081_p2, %p1075_p4 }
  0x4e   : > { %1085 = shalt.err (!%p1082_p0)
}
  0x4f   : > { %s1228_s30 = smov 64   ;;  %s1229_s10 = smov 4  }
  0x50   : > { %943 = dma.hbm_to_vmem [thread:$0]  (!%p1351_p7), %s1634_s6, 512, %s1361_s21, [#allocation9], %s1228_s30, %s1228_s30, %s1229_s10  }
  0x51   : > { %s838_s8 = sshll.u32 %s1386_s29, 3  ;;  %s875_s9 = sshll.u32 %s1224_s27, 7 }
  0x52   : > { %s1421_s20 = scalar_lea.hbm %s1628_s0, %s875_s9  ;;  %s265_s17 = scalar_lea.vmem [#allocation2], %s838_s8 }
  0x53   : > { %s272_s18 = sshll.u32 %s265_s17, 4  ;;  %s282_s3 = sand.u32 1, %s1224_s27   ;;  %s1423_s18 = int_to_ptr.vmem [resolvable:$true] %s272_s18 }
  0x54   : > { %s262_s26 = scalar_lea.sflag [#allocation3], %s1386_s29  ;;  %s1086_s14 = scalar_lea.hbm %s1421_s20, 128 }
  0x55   : > { %p1087_p9 = scmp.ne.s32.totalorder %s1421_s20, %s1086_s14  ;;  %p1659_p7 = scmp.ne.s32.totalorder %s1657_s19, 0 }
  0x56   : > { %s1091_s23 = scalar_lea.hbm %s1628_s0, 256  ;;  %p1092_p13 = scmp.lt.u32.totalorder %s1421_s20, %s1628_s0 }
  0x57   : > { %p1088_p6 = pneg %p1659_p7  ;;  %p1093_p1 = scmp.lt.u32.totalorder %s1091_s23, %s1086_s14 }
  0x58   : > { %p1095_p8 = scmp.lt.u32.totalorder %s1086_s14, %s1421_s20 }
  0x59   : > { %p1089_p11 = pnand %p1088_p6, %p1087_p9  ;;  %p1094_p3 = por %p1093_p1, %p1092_p13 }
  0x5b   : > { %p1090_p12 = pneg %p1089_p11  ;;  %p1096_p4 = por %p1095_p8, %p1094_p3 }
  0x5d   : > { %p1097_p5 = pnand %p1096_p4, %p1090_p12 }
  0x5f   : > { %1100 = shalt.err (!%p1097_p5)
}
  0x60   : > { %s1101_s8 = scalar_lea.vmem %s1423_s18, 128  ;;  %s1230_s16 = smov [#allocation2]  }
  0x61   : > { %p1102_p10 = scmp.ne.s32.totalorder %s1423_s18, %s1101_s8  ;;  %s1106_s17 = sshll.u32 %s1230_s16, 4  ;;  %s1107_s17 = int_to_ptr.vmem [resolvable:$false] %s1106_s17 }
  0x62   : > { %s1108_s21 = scalar_lea.vmem %s1107_s17, 256  ;;  %p1109_p9 = scmp.lt.s32.totalorder %s1423_s18, %s1107_s17 }
  0x63   : > { %p1104_p2 = pnand %p1102_p10, %p1088_p6  ;;  %p1110_p11 = scmp.lt.s32.totalorder %s1108_s21, %s1101_s8 }
  0x65   : > { %p1105_p0 = pneg %p1104_p2  ;;  %p1111_p13 = por %p1110_p11, %p1109_p9 }
  0x67   : > { %p1112_p1 = pnand %p1111_p13, %p1105_p0 }
  0x69   : > { %1115 = shalt.err (!%p1112_p1)
}
  0x6a   : > { %947 = dma.hbm_to_vmem [thread:$0]  (!%p1659_p7), %s1421_s20, 128, %s1423_s18, %s262_s26, %s1228_s30, %s1228_s30, %s1229_s10  }
  0x6b   : > { %s841_s14 = sshll.u32 %s1386_s29, 4  ;;  %s876_s22 = sshll.u32 %s1224_s27, 8 }
  0x6c   : > { %s1462_s11 = scalar_lea.hbm %s1630_s2, %s876_s22  ;;  %s286_s8 = scalar_lea.vmem [#allocation5], %s841_s14 }
  0x6d   : > { %s293_s16 = sshll.u32 %s286_s8, 4  ;;  %s1468_s17 = scalar_lea.sflag [#allocation6], %s282_s3  ;;  %s1464_s16 = int_to_ptr.vmem [resolvable:$true] %s293_s16 }
  0x6e   : > { %s1116_s21 = scalar_lea.hbm %s1462_s11, 256  ;;  %s1121_s30 = scalar_lea.hbm %s1630_s2, 512 }
  0x6f   : > { %p1117_p12 = scmp.ne.s32.totalorder %s1462_s11, %s1116_s21  ;;  %p1122_p4 = scmp.lt.u32.totalorder %s1462_s11, %s1630_s2 }
  0x70   : > { %p1123_p5 = scmp.lt.u32.totalorder %s1121_s30, %s1116_s21  ;;  %p1125_p2 = scmp.lt.u32.totalorder %s1116_s21, %s1462_s11 }
  0x71   : > { %p1119_p3 = pnand %p1117_p12, %p1088_p6 }
  0x72   : > { %p1124_p10 = por %p1123_p5, %p1122_p4 }
  0x73   : > { %p1120_p8 = pneg %p1119_p3 }
  0x74   : > { %p1126_p0 = por %p1125_p2, %p1124_p10 }
  0x76   : > { %p1127_p9 = pnand %p1126_p0, %p1120_p8 }
  0x78   : > { %1130 = shalt.err (!%p1127_p9)
}
  0x79   : > { %s1131_s3 = scalar_lea.vmem %s1464_s16, 256  ;;  %s1231_s18 = smov [#allocation5]  }
  0x7a   : > { %p1132_p11 = scmp.ne.s32.totalorder %s1464_s16, %s1131_s3  ;;  %s1136_s14 = sshll.u32 %s1231_s18, 4  ;;  %s1137_s14 = int_to_ptr.vmem [resolvable:$false] %s1136_s14 }
  0x7b   : > { %s1138_s22 = scalar_lea.vmem %s1137_s14, 512  ;;  %p1139_p12 = scmp.lt.s32.totalorder %s1464_s16, %s1137_s14 }
  0x7c   : > { %p1134_p13 = pnand %p1132_p11, %p1088_p6  ;;  %p1140_p3 = scmp.lt.s32.totalorder %s1138_s22, %s1131_s3 }
  0x7e   : > { %p1135_p1 = pneg %p1134_p13  ;;  %p1141_p4 = por %p1140_p3, %p1139_p12 }
  0x80   : > { %p1142_p5 = pnand %p1141_p4, %p1135_p1 }
  0x82   : > { %1145 = shalt.err (!%p1142_p5)
}
  0x83   : > { %s1232_s23 = smov 128   ;;  %s1233_s9 = smov 8  }
  0x84   : > { %950 = dma.hbm_to_vmem [thread:$0]  (!%p1659_p7), %s1462_s11, 256, %s1464_s16, %s1468_s17, %s1232_s23, %s1232_s23, %s1233_s9  }
  0x85   : > { %p1660_p6 = scmp.ne.s32.totalorder %s1654_s15, 0 }
  0x86   : > { %s1497_s8 = sand.u32 (!%p1660_p6), 1, %s1216_s25   ;;  %p1661_p8 = scmp.ne.s32.totalorder (!%p1660_p6), %s1650_s12, 0 }
  0x87   : > { %305 = sbr.rel (%p1660_p6) target bundleno = 1002 (0x3ea), region = 48  ;;  %s845_s21 = sshll.u32 (!%p1660_p6), %s1497_s8, 3 }
  0x88   : > { %s308_s26 = scalar_lea.sflag (!%p1660_p6), [#allocation3], %s1497_s8  ;;  %s311_s29 = scalar_lea.vmem (!%p1660_p6), [#allocation2], %s845_s21 }
  0x8e   : > { %1191 = dma.done.wait (%p1661_p8), %s308_s26, 128  }
  0x8f   : > { %1193 = vsyncadd (%p1661_p8), %s308_s26, 4294967168  ;;  %s316_s15 = sand.u32 1, %s1302_s28   ;;  %s846_s19 = sshll.u32 %s1497_s8, 4 }
  0x90   : > { %s317_s11 = scalar_lea.sflag [#allocation6], %s316_s15  ;;  %s1509_s16 = scalar_lea.vmem [#allocation5], %s846_s19 }
  0x91   : > { %1195 = dma.done.wait (%p1661_p8), %s317_s11, 256  }
  0x92   : > { %1197 = vsyncadd (%p1661_p8), %s317_s11, 4294967040  ;;  %p1662_p7 = scmp.eq.s32.totalorder %s1302_s28, 0 }
  0x94   : > { %1199 = dma.done.wait (%p1662_p7), [#allocation6], 128   ;;  %p1663_p10 = pmov %p1662_p7 }
  0x95   : > { %p1664_p2 = pmov %p1662_p7 }
  0x96   : > { %1201 = vsyncadd (%p1663_p10), [#allocation6], 4294967168 }
  0x97   : > { %1203 = dma.done.wait (%p1664_p2), [#allocation9], 512   ;;  %p1665_p0 = pmov %p1664_p2 }
  0x98   : > { %v1234_v0 = vmov 0.0   ;;  %vm1235_vm0 = vmmov 0   ;;  %v1005_v1 = vld [vmem:[%s1629_s1] sm:$0xff]   ;;  %v1006_v2 = vld [vmem:[%s1629_s1 + $0x8] sm:$0xff]   ;;  %vm393_vm1 = vcmask 261120   ;;  %v439_v4 = vld [vmem:[#allocation7] sm:$0xff]  ;;  %v442_v23 = vlaneseq }
  0x99   : > { %1205 = vsyncadd (%p1665_p0), [#allocation9], 4294966784  ;;  %891 = vmatprep.subr.bf16.mxu0 %v1234_v0  ;;  %895 = vmatprep.mubr.msk.bf16.mxu0 %vm1235_vm0, %v1234_v0  ;;  %v1007_v3 = vld [vmem:[%s311_s29] sm:$0xff]   ;;  %v855_v5 = vcombine.high %v439_v4, %v439_v4  ;;  %v854_v6 = vcombine.low %v439_v4, %v439_v4  ;;  %vm461_vm2 = vcmask 1043456   ;;  %v1236_v8 = vmov 0   ;;  %v1012_v16 = vld [vmem:[%s1633_s5 + $0x10] sm:$0xff]  }
  0x9a   : > { %892 = vmatpush3.bf16.msra.mxu0 %v1005_v1  ;;  %500 = vmatprep.mubr.bf16.mxu1 %v1236_v8  ;;  %vm457_vm3 = vcmask 64512   ;;  %v1010_v12 = vld [vmem:[%s1633_s5] sm:$0xff]   ;;  %v1011_v15 = vld [vmem:[%s1633_s5 + $0x8] sm:$0xff]   ;;  %v1013_v17 = vld [vmem:[%s1633_s5 + $0x18] sm:$0xff]   ;;  %vm544_vm4 = vcmask 523264   ;;  %v443_v27 = vshrl.u32 %v442_v23, 7 }
  0x9b   : > { %893 = vmatprep.subr.bf16.mxu0 %v1234_v0  ;;  %856 = vmatprep.subr.msk.bf16.mxu1 %vm461_vm2, %v855_v5  ;;  %v463_v7 = vsel %vm461_vm2, %v854_v6, 0  ;;  %v1554_v18 = vld [vmem:[%s1509_s16] sm:$0xff]  ;;  %v1557_v19 = vld [vmem:[%s1509_s16 + $0x8] sm:$0xff]  ;;  %s1237_s15 = smov 64   ;;  %s877_s11 = sshll.u32 %s1302_s28, 8 }
  0x9c   : > { %469 = vmatpush1.bf16.msra.mxu1 %v463_v7  ;;  %v511_v20 = vpack.c.bf16 %v1557_v19, %v1554_v18  ;;  %v1014_v21 = vld [vmem:[#allocation8] sm:$0xff]   ;;  %v1015_v22 = vld [vmem:[#allocation8 + $0x8] sm:$0xff]   ;;  %v444_v29 = vsub.s32 0, %v443_v27  ;;  %v1016_v43 = vld [vmem:[#allocation8 + $0x10] sm:$0xff]   ;;  %v448_v55 = vsub.s32 1, %v443_v27  ;;  %s363_s16 = scalar_lea.vmem [#allocation10], %s846_s19  ;;  %s1580_s10 = scalar_lea.hbm %s1635_s7, %s877_s11 }
  0x9d   : > { %899 = vmatprep.subr.bf16.mxu1 %v1234_v0  ;;  %v440_v30 = vld [vmem:[%s1632_s4] sm:$0x3]  ;;  %v1017_v47 = vld [vmem:[#allocation8 + $0x18] sm:$0xff]   ;;  %s718_s12 = sshll.u32 %s363_s16, 4  ;;  %s705_s28 = scalar_lea.sflag [#allocation4], %s1497_s8  ;;  %s1582_s12 = int_to_ptr.vmem [resolvable:$true] %s718_s12 }
  0x9e   : > { %894 = vmatpush3.bf16.msra.mxu0 %v1006_v2  ;;  %v445_v31 = vrot.slane %v440_v30, %v444_v29  ;;  %v449_v56 = vrot.slane %v440_v30, %v448_v55  ;;  %s1146_s19 = scalar_lea.vmem %s1582_s12, 256  ;;  %p1666_p11 = scmp.ne.s32.totalorder %s1651_s13, 0 }
  0x9f   : > { %911 = vmatprep.subr.bf16.mxu0 %v1234_v0  ;;  %p1147_p9 = scmp.ne.s32.totalorder %s1582_s12, %s1146_s19  ;;  %s1238_s20 = smov [#allocation10]  }
  0xa0   : > { %s1150_s3 = sshll.u32 %s1238_s20, 4  ;;  %s1151_s3 = int_to_ptr.vmem [resolvable:$false] %s1150_s3 }
  0xa1   : > { %896 = vmatmul.mubr.msk.bf16.vlgmr.msra.gmra.mrb[0].mxu0 %vm393_vm1, %v1007_v3  ;;  %p1148_p13 = pnand %p1147_p9, %p1666_p11  ;;  %s1152_s18 = scalar_lea.vmem %s1151_s3, 512 }
  0xa2   : > { %919 = vmatprep.mubr.msk.bf16.mxu0 %vm1235_vm0, %v1234_v0  ;;  %912 = vmatpush3.bf16.msra.mxu0 %v1014_v21  ;;  %p1153_p12 = scmp.lt.s32.totalorder %s1582_s12, %s1151_s3  ;;  %p1154_p3 = scmp.lt.s32.totalorder %s1152_s18, %s1146_s19 }
  0xa3   : > { %913 = vmatprep.subr.bf16.mxu0 %v1234_v0  ;;  %p1149_p1 = pneg %p1148_p13 }
  0xa4   : > { %p1155_p4 = por %p1154_p3, %p1153_p12 }
  0xa6   : > { %914 = vmatpush3.bf16.msra.mxu0 %v1015_v22  ;;  %p1156_p5 = pnand %p1155_p4, %p1149_p1 }
  0xa7   : > { %915 = vmatprep.subr.bf16.mxu0 %v1234_v0 }
  0xaa   : > { %916 = vmatpush3.bf16.msra.mxu0 %v1016_v43 }
  0xab   : > { %917 = vmatprep.subr.bf16.mxu0 %v1234_v0 }
  0xae   : > { %918 = vmatpush3.bf16.msra.mxu0 %v1017_v47 }
 0x174   : > { %v431_v9 = vpop.f32.mrb[0].mxu0 }
 0x175   : > { %v897_v10 = vpop.f32.mrb[1].mxu0 }
 0x176   : > { %v434_v11 = vpop.f32.mrb[2].mxu0 }
 0x177   : > { %v438_v13 = vpack.c.bf16 %v434_v11, %v431_v9  ;;  %v898_v14 = vpop.f32.mrb[3].mxu0 }
 0x179   : > { %857 = vmatmul.mubr.msk.bf16.vlgmr.msra.gmra.mrb[0].mxu1 %vm457_vm3, %v438_v13 }
 0x17a   : > { %900 = vmatpush3.bf16.msra.mxu1 %v1010_v12  ;;  %907 = vmatprep.mubr.msk.bf16.mxu1 %vm1235_vm0, %v1234_v0 }
 0x17b   : > { %901 = vmatprep.subr.bf16.mxu1 %v1234_v0 }
 0x17e   : > { %902 = vmatpush3.bf16.msra.mxu1 %v1011_v15 }
 0x17f   : > { %903 = vmatprep.subr.bf16.mxu1 %v1234_v0 }
 0x182   : > { %904 = vmatpush3.bf16.msra.mxu1 %v1012_v16 }
 0x183   : > { %905 = vmatprep.subr.bf16.mxu1 %v1234_v0 }
 0x186   : > { %906 = vmatpush3.bf16.msra.mxu1 %v1013_v17 }
 0x189   : > { %908 = vmatmul.mubr.msk.bf16.vlgmr.msra.gmra.mrb[4].mxu1 %vm544_vm4, %v511_v20 }
 0x24c   : > { %v502_v24 = vpop.f32.mrb[0].mxu1 }
 0x24d   : > { %v504_v25 = vpop.f32.mrb[1].mxu1  ;;  %v503_v32 = vadd.f32 %v502_v24, %v445_v31 }
 0x24e   : > { %v506_v26 = vpop.f32.mrb[2].mxu1  ;;  %v505_v57 = vadd.f32 %v504_v25, %v449_v56 }
 0x24f   : > { %v508_v28 = vpop.f32.mrb[3].mxu1  ;;  %v507_v34 = vadd.f32 %v506_v26, %v445_v31 }
 0x250   : > { %v509_v59 = vadd.f32 %v508_v28, %v449_v56 }
 0x25c   : > { %v582_v33 = vpop.f32.mrb[4].mxu1 }
 0x25d   : > { %v589_v35 = vadd.f32 %v582_v33, %v503_v32  ;;  %v909_v36 = vpop.f32.mrb[5].mxu1 }
 0x25e   : > { %v585_v37 = vpop.f32.mrb[6].mxu1 }
 0x25f   : > { %v863_v38 = vmul.f32 -1.442695, %v589_v35  ;;  %v590_v39 = vadd.f32 %v585_v37, %v507_v34  ;;  %v910_v40 = vpop.f32.mrb[7].mxu1 }
 0x261   : > { %1018 = vpow2.f32 %v863_v38  ;;  %v864_v41 = vmul.f32 -1.442695, %v590_v39 }
 0x263   : > { %1020 = vpow2.f32 %v864_v41 }
 0x26b   : > { %v1019_v42 = vpop.eup %1018 }
 0x26c   : > { %v597_v44 = vadd.f32 1.0, %v1019_v42 }
 0x26d   : > { %v1021_v45 = vpop.eup %1020 }
 0x26e   : > { %1022 = vrcp.f32 %v597_v44  ;;  %v598_v46 = vadd.f32 1.0, %v1021_v45 }
 0x270   : > { %1024 = vrcp.f32 %v598_v46 }
 0x278   : > { %v1023_v48 = vpop.eup %1022 }
 0x279   : > { %605 = vrot.lane.b32.xlu0 %v1023_v48, %s1237_s15  ;;  %v696_v1 = vsub.f32 1.0, %v1023_v48  ;;  %v694_v3 = vmul.f32 %v1023_v48, %v1554_v18 }
 0x27a   : > { %v1025_v49 = vpop.eup %1024 }
 0x27b   : > { %v697_v5 = vsub.f32 1.0, %v1025_v49  ;;  %v695_v8 = vmul.f32 %v1025_v49, %v1557_v19 }
 0x27d   : > { %607 = vrot.lane.b32.xlu0 %v1025_v49, %s1237_s15 }
 0x2eb   : > { %v606_v50 = vpop.permute.xlu0 %605 }
 0x2ec   : > { %v611_v52 = vmul.f32 %v606_v50, %v1554_v18 }
 0x2ef   : > { %v608_v51 = vpop.permute.xlu0 %607 }
 0x2f0   : > { %v612_v53 = vmul.f32 %v608_v51, %v1557_v19 }
 0x2f2   : > { %v613_v54 = vpack.c.bf16 %v612_v53, %v611_v52 }
 0x2f4   : > { %920 = vmatmul.mubr.msk.bf16.vlgmr.msra.gmra.mrb[4].mxu0 %vm544_vm4, %v613_v54 }
 0x3c7   : > { %v683_v58 = vpop.f32.mrb[4].mxu0 }
 0x3c8   : > { %v690_v60 = vadd.f32 %v683_v58, %v505_v57  ;;  %v921_v61 = vpop.f32.mrb[5].mxu0 }
 0x3c9   : > { %v686_v62 = vpop.f32.mrb[6].mxu0 }
 0x3ca   : > { %1026 = vtanh.f32 %v690_v60  ;;  %v691_v63 = vadd.f32 %v686_v62, %v509_v59  ;;  %v922_v0 = vpop.f32.mrb[7].mxu0 }
 0x3cc   : > { %1028 = vtanh.f32 %v691_v63 }
 0x3d4   : > { %v1027_v2 = vpop.eup %1026 }
 0x3d5   : > { %v698_v4 = vmul.f32 %v1027_v2, %v696_v1 }
 0x3d6   : > { %v1029_v6 = vpop.eup %1028 }
 0x3d7   : > { %v700_v7 = vadd.f32 %v698_v4, %v694_v3  ;;  %v699_v9 = vmul.f32 %v1029_v6, %v697_v5 }
 0x3d9   : > { %v701_v10 = vadd.f32 %v699_v9, %v695_v8  ;;  %702 = vst.msk [vmem:[%s363_s16] sm:$0xff] %vm544_vm4, %v700_v7 }
 0x3db   : > { %703 = vst.msk [vmem:[%s363_s16 + $0x8] sm:$0xff] %vm544_vm4, %v701_v10 }
 0x3dc   : > { %1159 = shalt.err (!%p1156_p5)
}
 0x3dd   : > { %s1160_s14 = scalar_lea.hbm %s1580_s10, 256  ;;  %s1164_s9 = scalar_lea.hbm %s1635_s7, 512 }
 0x3de   : > { %p1161_p6 = scmp.ne.s32.totalorder %s1580_s10, %s1160_s14  ;;  %p1165_p10 = scmp.lt.u32.totalorder %s1580_s10, %s1635_s7 }
 0x3df   : > { %p1166_p2 = scmp.lt.u32.totalorder %s1164_s9, %s1160_s14  ;;  %p1168_p9 = scmp.lt.u32.totalorder %s1160_s14, %s1580_s10 }
 0x3e0   : > { %p1162_p8 = pnand %p1161_p6, %p1666_p11 }
 0x3e1   : > { %p1167_p0 = por %p1166_p2, %p1165_p10 }
 0x3e2   : > { %p1163_p7 = pneg %p1162_p8 }
 0x3e3   : > { %p1169_p13 = por %p1168_p9, %p1167_p0 }
 0x3e5   : > { %p1170_p1 = pnand %p1169_p13, %p1163_p7 }
 0x3e7   : > { %1173 = shalt.err (!%p1170_p1)
}
 0x3e8   : > { %s1239_s29 = smov 128   ;;  %s1240_s15 = smov 8  }
 0x3e9   : > { %935 = dma.vmem_to_hbm [thread:$0]  (%p1666_p11), %s1582_s12, 256, %s1580_s10, %s705_s28, %s1239_s29, %s1239_s29, %s1240_s15  }
 0x3ea PF: > { %s1667_s11 = sld [smem:[#allocation19_spill]]  ;;  %s733_s16 = sand.u32 1, %s1212_s24  }
 0x3eb   : > { %p1669_p3 = scmp.ge.s32.totalorder %s1224_s27, 2  ;;  %s734_s17 = scalar_lea.sflag [#allocation4], %s733_s16 }
 0x3f0   : > { %p1668_p12 = scmp.ne.s32.totalorder %s1667_s11, 0 }
 0x3f2   : > { %p952_p4 = pnand %p1669_p3, %p1668_p12 }
 0x3f4   : > { %1207 = dma.done.wait (!%p952_p4), %s734_s17, 256  }
 0x3f5   : > { %1209 = vsyncadd (!%p952_p4), %s734_s17, 4294967040  ;;  %s1670_s27 = sld [smem:[#allocation17_spill]]  ;;  %s1671_s30 = sld [smem:[#allocation16_spill]] }
 0x3f6   : > { %s1672_s26 = sld [smem:[#allocation18_spill]]  ;;  %s1673_s24 = smov %s1216_s25 }
 0x3fb   : > { %p24_p5 = scmp.ge.s32.totalorder %s1670_s27, 4   ;;  %s1674_s25 = smov %s1671_s30 }
 0x3fd   :  { %26 = sbr.rel (!%p24_p5) target bundleno = 10 (0xa), region = 114 }
 0x404   :  { %739 = vsyncpa [#allocation3], 1 }
 0x405   :  { %741 = vsyncpa [#allocation3 + $0x1], 1 }
 0x406   :  { %742 = vsyncpa [#allocation6], 1 }
 0x407   :  { %744 = vsyncpa [#allocation6 + $0x1], 1 }
 0x408   :  { %745 = vsyncpa [#allocation9], 1 }
 0x409   :  { %746 = vsyncpa [#allocation4], 1 }
 0x40a   :  { %748 = vsyncpa [#allocation4 + $0x1], 1 }

</bundles_post_ra>
